<compile_context>
chip_gen: v7x
topology: tpu7x:2x2x1
jax: 0.10.0
libtpu: 0.0.40
codegen_flags: <defaults>
</compile_context>

<pallas_src>
import functools

import jax
import jax.numpy as jnp
from jax.experimental import pallas as pl
from jax.experimental.pallas import tpu as pltpu

_MIB = 1024 * 1024


def _cdiv(a, b):
    return (a + b - 1) // b


def _sublane_multiple(dtype):
    """Packed-sublane multiple: 8 for 32-bit, 16 for 16-bit, 32 for 8-bit dtypes."""
    return max(8, 32 // max(1, jnp.dtype(dtype).itemsize))


def _hw_params():
    """Returns (physical VMEM bytes, multi-TensorCore?) with conservative fallbacks."""
    vmem_bytes = 64 * _MIB          # smallest current part (v7x per-TC)
    multi_tc = True                 # assume 2 TCs unless proven single-TC
    try:
        vmem_bytes = int(pltpu.get_tpu_info().vmem_capacity_bytes)
    except Exception:
        pass
    try:
        kind = jax.devices()[0].device_kind.lower()
        # v5e / v6e are single-TensorCore parts; v4 / v5p / v7x expose 2 TCs.
        single_tc = any(tag in kind for tag in
                        ("v5 lite", "v5e", "v5litepod", "v6 lite", "v6e"))
        multi_tc = not single_tc
    except Exception:
        pass
    return vmem_bytes, multi_tc


# --------------------------------------------------------------------------------------
# Path 1: whole sequence resident per grid step (one (tb, S, H) slab per step)
# --------------------------------------------------------------------------------------
def _attn_pool_kernel(x_ref, mask_ref, w_ref, b_ref, o_ref):
    # x_ref: (tb, S, H) VMEM, mask_ref: (tb, S) VMEM, w_ref: (1, H) VMEM, b_ref: (1,1) SMEM
    x = x_ref[...].astype(jnp.float32)
    w = w_ref[...].astype(jnp.float32)            # (1, H)
    bias = b_ref[0, 0]
    m = mask_ref[...].astype(jnp.float32)         # (tb, S)

    # Linear(H -> 1) score: VPU multiply + lane reduce (no transpose, no M=1 matmul)
    scores = jnp.sum(x * w, axis=-1) + bias       # (tb, S)
    scores = scores * m                           # multiplicative mask on logits (torch parity)

    mx = jnp.max(scores, axis=-1, keepdims=True)
    e = jnp.exp(scores - mx)
    s = jnp.sum(e, axis=-1, keepdims=True)
    p = e * pl.reciprocal(s, approx=False)
    # redundant second renormalization kept for parity with the torch module
    p = p * pl.reciprocal(jnp.sum(p, axis=-1, keepdims=True) + 1e-13, approx=False)

    pooled = jnp.sum(p[:, :, None] * x, axis=1)   # (tb, H): VPU mul + sublane reduce
    o_ref[...] = pooled.astype(o_ref.dtype)


# --------------------------------------------------------------------------------------
# Path 2: sequence-tiled online softmax (large S*H rows; keeps double-buffering on v7x)
# --------------------------------------------------------------------------------------
def _attn_pool_seq_kernel(x_ref, mask_ref, w_ref, b_ref, o_ref,
                          m_sc, l_sc, acc_sc, *, seq_len, seq_tile):
    j = pl.program_id(1)

    @pl.when(j == 0)
    def _():
        m_sc[...] = jnp.full_like(m_sc, -jnp.inf)
        l_sc[...] = jnp.zeros_like(l_sc)
        acc_sc[...] = jnp.zeros_like(acc_sc)

    w = w_ref[...].astype(jnp.float32)            # (1, H)
    bias = b_ref[0, 0]
    msk = mask_ref[...].astype(jnp.float32)       # (tb, ts)

    # Mask the partial last S tile: padding columns get zero softmax weight and their
    # (unspecified) x values are zeroed so 0*garbage can never produce NaN/Inf.
    col = j * seq_tile + jax.lax.broadcasted_iota(jnp.int32, msk.shape, 1)
    valid = col < seq_len                         # (tb, ts)

    x = jnp.where(valid[:, :, None], x_ref[...].astype(jnp.float32), 0.0)
    scores = jnp.sum(x * w, axis=-1) + bias       # (tb, ts)
    scores = jnp.where(valid, scores * msk, -jnp.inf)

    m_prev = m_sc[...]
    m_new = jnp.maximum(m_prev, jnp.max(scores, axis=-1, keepdims=True))
    alpha = jnp.exp(m_prev - m_new)
    e = jnp.exp(scores - m_new)
    l_sc[...] = alpha * l_sc[...] + jnp.sum(e, axis=-1, keepdims=True)
    acc_sc[...] = alpha * acc_sc[...] + jnp.sum(e[:, :, None] * x, axis=1)
    m_sc[...] = m_new

    @pl.when(j == pl.num_programs(1) - 1)
    def _():
        inv_l = pl.reciprocal(l_sc[...], approx=False)
        # parity with the redundant second renormalization (sum(p) == l * inv_l up to rounding)
        corr = pl.reciprocal(l_sc[...] * inv_l + 1e-13, approx=False)
        o_ref[...] = (acc_sc[...] * inv_l * corr).astype(o_ref.dtype)


# --------------------------------------------------------------------------------------
# Wrapper
# --------------------------------------------------------------------------------------
def attention_pooling(tensor, mask, w, b, *, tile_budget_bytes=None, interpret=False):
    """tensor: (B, S, H), mask: (B, S), w: (1, H), b: (1,) -> (B, H)."""
    B, S, H = tensor.shape
    dtype = tensor.dtype
    itemsize = jnp.dtype(dtype).itemsize
    sub = _sublane_multiple(dtype)

    vmem_cap, multi_tc = _hw_params()
    big_vmem = vmem_cap >= 100 * _MIB             # v5e/v6e (128 MiB) vs v7x (64 MiB per TC)
    if tile_budget_bytes is None:
        tile_budget_bytes = (20 if big_vmem else 12) * _MIB
    vmem_limit_bytes = (80 if big_vmem else 40) * _MIB

    w2d = jnp.asarray(w).reshape(1, H)
    b2d = jnp.asarray(b, dtype=jnp.float32).reshape(1, 1)
    out_shape = jax.ShapeDtypeStruct((B, H), dtype)

    row_bytes = S * H * itemsize
    tb_min = B if B < sub else sub

    if 2 * max(1, tb_min) * row_bytes <= tile_budget_bytes:
        # ---- whole-sequence path: one (tb, S, H) slab per grid step ----
        tb = (tile_budget_bytes // (2 * max(1, row_bytes))) // sub * sub
        tb = max(sub, min(tb, 512))
        if B < sub:
            tb = B                                # block == full batch dim
        else:
            tb = min(tb, (B // sub) * sub)        # partial blocks only at the trailing edge
            if multi_tc:
                # 2 TCs share HBM: prefer an even number of grid steps so the "parallel"
                # batch axis splits 50/50 across cores.
                t = tb
                while t > sub and _cdiv(B, t) % 2 != 0:
                    t -= sub
                if _cdiv(B, t) % 2 == 0:
                    tb = t
        grid = (_cdiv(B, tb),)
        return pl.pallas_call(
            _attn_pool_kernel,
            out_shape=out_shape,
            grid_spec=pltpu.PrefetchScalarGridSpec(
                num_scalar_prefetch=0,
                grid=grid,
                in_specs=[
                    pl.BlockSpec((tb, S, H), lambda i: (i, 0, 0)),      # tensor
                    pl.BlockSpec((tb, S), lambda i: (i, 0)),            # mask
                    pl.BlockSpec((1, H), lambda i: (0, 0)),             # linear weight
                    pl.BlockSpec(memory_space=pltpu.MemorySpace.SMEM),  # bias scalar
                ],
                out_specs=pl.BlockSpec((tb, H), lambda i: (i, 0)),
            ),
            compiler_params=pltpu.CompilerParams(
                dimension_semantics=("parallel",),
                vmem_limit_bytes=vmem_limit_bytes,
            ),
            interpret=interpret,
        )(tensor, mask, w2d, b2d)

    # ---- sequence-tiled online-softmax path (rows too big for a double-buffered slab) ----
    tb = tb_min
    if S <= 128:
        ts = S
    else:
        ts = (tile_budget_bytes // (2 * max(1, tb * H * itemsize))) // 128 * 128
        ts = max(128, min(ts, (S // 128) * 128))  # multiple of 128 (mask lane dim)
    grid = (_cdiv(B, tb), _cdiv(S, ts))
    kernel = functools.partial(_attn_pool_seq_kernel, seq_len=S, seq_tile=ts)
    return pl.pallas_call(
        kernel,
        out_shape=out_shape,
        grid_spec=pltpu.PrefetchScalarGridSpec(
            num_scalar_prefetch=0,
            grid=grid,
            in_specs=[
                pl.BlockSpec((tb, ts, H), lambda i, j: (i, j, 0)),      # tensor
                pl.BlockSpec((tb, ts), lambda i, j: (i, j)),            # mask
                pl.BlockSpec((1, H), lambda i, j: (0, 0)),              # linear weight
                pl.BlockSpec(memory_space=pltpu.MemorySpace.SMEM),      # bias scalar
            ],
            out_specs=pl.BlockSpec((tb, H), lambda i, j: (i, 0)),
            scratch_shapes=[
                pltpu.VMEM((tb, 1), jnp.float32),   # running max
                pltpu.VMEM((tb, 1), jnp.float32),   # running denom
                pltpu.VMEM((tb, H), jnp.float32),   # running weighted sum
            ],
        ),
        compiler_params=pltpu.CompilerParams(
            dimension_semantics=("parallel", "arbitrary"),
            vmem_limit_bytes=vmem_limit_bytes,
        ),
        interpret=interpret,
    )(tensor, mask, w2d, b2d)


def attention_pooling_ref(tensor, mask, w, b):
    """Pure-JAX reference mirroring the PyTorch forward."""
    scores = jnp.einsum("bsh,oh->bso", tensor, w)[..., 0] + b[0]
    scores = scores * mask
    p = jax.nn.softmax(scores, axis=-1)
    p = p / (p.sum(axis=-1, keepdims=True) + 1e-13)
    return jnp.einsum("bs,bsh->bh", p, tensor)


if __name__ == "__main__":
    key = jax.random.PRNGKey(0)
    k_x, k_m, k_w, k_b, k_x2, k_m2 = jax.random.split(key, 6)

    # Small shapes consistent with the module (B, S, H)
    B, S, H = 2, 8, 32
    tensor = jax.random.normal(k_x, (B, S, H), dtype=jnp.float32)
    mask = (jax.random.uniform(k_m, (B, S)) > 0.3).astype(jnp.float32)
    bound = 1.0 / (H ** 0.5)
    w = jax.random.uniform(k_w, (1, H), minval=-bound, maxval=bound, dtype=jnp.float32)
    b = jax.random.uniform(k_b, (1,), minval=-bound, maxval=bound, dtype=jnp.float32)

    out = jax.block_until_ready(attention_pooling(tensor, mask, w, b))
    ref = attention_pooling_ref(tensor, mask, w, b)
    assert out.shape == (B, H)
    assert jnp.allclose(out, ref, atol=1e-5, rtol=1e-5), "mismatch vs reference (slab path)"

    # Exercise the sequence-tiled online-softmax fallback with a forced small tile budget:
    # partial last S tile (320 = 2*128 + 64) and a batch that doesn't divide the tile (10).
    B2, S2, H2 = 10, 320, 128
    tensor2 = jax.random.normal(k_x2, (B2, S2, H2), dtype=jnp.float32)
    mask2 = (jax.random.uniform(k_m2, (B2, S2)) > 0.3).astype(jnp.float32)
    bound2 = 1.0 / (H2 ** 0.5)
    w2 = jax.random.uniform(k_w, (1, H2), minval=-bound2, maxval=bound2, dtype=jnp.float32)
    b2 = jax.random.uniform(k_b, (1,), minval=-bound2, maxval=bound2, dtype=jnp.float32)

    out2 = jax.block_until_ready(
        attention_pooling(tensor2, mask2, w2, b2, tile_budget_bytes=1 * _MIB))
    ref2 = attention_pooling_ref(tensor2, mask2, w2, b2)
    assert out2.shape == (B2, H2)
    assert jnp.allclose(out2, ref2, atol=1e-5, rtol=1e-5), "mismatch vs reference (seq path)"

    print("KERNEL_OK")
</pallas_src>

<mosaic_0001>
module attributes {stable_mosaic.version = 11 : i64} {
  func.func @_attn_pool_kernel(%arg0: i32, %arg1: memref<2x8x32xf32, #tpu.memory_space<vmem>>, %arg2: memref<2x8xf32, #tpu.memory_space<vmem>>, %arg3: memref<1x32xf32, #tpu.memory_space<vmem>>, %arg4: memref<1x1xf32, #tpu.memory_space<smem>>, %arg5: memref<2x32xf32, #tpu.memory_space<vmem>>) attributes {dimension_semantics = [#tpu.dimension_semantics<parallel>], iteration_bounds = array<i64: 1>, scalar_prefetch = 0 : i64, scratch_operands = 0 : i64, tpu.core_type = #tpu.core_type<tc>, window_params = [{transform_indices = @transform_0, window_bounds = array<i64: 2, 8, 32>}, {transform_indices = @transform_1, window_bounds = array<i64: 2, 8>}, {pipeline_mode = #tpu.pipeline_mode<synchronous>, transform_indices = @transform_2, window_bounds = array<i64: 1, 32>}, {transform_indices = @transform_3, window_bounds = array<i64: 1, 1>}, {transform_indices = @transform_4, window_bounds = array<i64: 2, 32>}]} {
    %c0 = arith.constant 0 : index
    %c0_0 = arith.constant 0 : index
    %c0_1 = arith.constant 0 : index
    %0 = vector.load %arg1[%c0, %c0_0, %c0_1] : memref<2x8x32xf32, #tpu.memory_space<vmem>>, vector<2x8x32xf32>
    %c0_2 = arith.constant 0 : index
    %c0_3 = arith.constant 0 : index
    %1 = vector.load %arg3[%c0_2, %c0_3] : memref<1x32xf32, #tpu.memory_space<vmem>>, vector<1x32xf32>
    %c0_4 = arith.constant 0 : index
    %c0_5 = arith.constant 0 : index
    %2 = memref.load %arg4[%c0_4, %c0_5] : memref<1x1xf32, #tpu.memory_space<smem>>
    %c0_6 = arith.constant 0 : index
    %c0_7 = arith.constant 0 : index
    %3 = vector.load %arg2[%c0_6, %c0_7] : memref<2x8xf32, #tpu.memory_space<vmem>>, vector<2x8xf32>
    %4 = vector.shape_cast %1 : vector<1x32xf32> to vector<1x1x32xf32>
    %5 = vector.broadcast %4 : vector<1x1x32xf32> to vector<2x8x32xf32>
    %6 = arith.mulf %0, %5 : vector<2x8x32xf32>
    %cst = arith.constant dense<0.000000e+00> : vector<2x8xf32>
    %7 = vector.multi_reduction <add>, %6, %cst [2] : vector<2x8x32xf32> to vector<2x8xf32>
    %8 = vector.broadcast %2 : f32 to vector<2x8xf32>
    %9 = arith.addf %7, %8 : vector<2x8xf32>
    %10 = arith.mulf %9, %3 : vector<2x8xf32>
    %cst_8 = arith.constant dense<0xFF800000> : vector<2xf32>
    %11 = vector.multi_reduction <maximumf>, %10, %cst_8 [1] : vector<2x8xf32> to vector<2xf32>
    %12 = vector.shape_cast %11 : vector<2xf32> to vector<2x1xf32>
    %13 = vector.broadcast %12 : vector<2x1xf32> to vector<2x8xf32>
    %14 = arith.subf %10, %13 : vector<2x8xf32>
    %15 = math.exp %14 : vector<2x8xf32>
    %cst_9 = arith.constant dense<0.000000e+00> : vector<2xf32>
    %16 = vector.multi_reduction <add>, %15, %cst_9 [1] : vector<2x8xf32> to vector<2xf32>
    %17 = vector.shape_cast %16 : vector<2xf32> to vector<2x1xf32>
    %18 = tpu.reciprocal %17 : vector<2x1xf32> -> vector<2x1xf32>
    %19 = vector.broadcast %18 : vector<2x1xf32> to vector<2x8xf32>
    %20 = arith.mulf %15, %19 : vector<2x8xf32>
    %cst_10 = arith.constant dense<0.000000e+00> : vector<2xf32>
    %21 = vector.multi_reduction <add>, %20, %cst_10 [1] : vector<2x8xf32> to vector<2xf32>
    %22 = vector.shape_cast %21 : vector<2xf32> to vector<2x1xf32>
    %cst_11 = arith.constant 9.99999982E-14 : f32
    %23 = vector.broadcast %cst_11 : f32 to vector<2x1xf32>
    %24 = arith.addf %22, %23 : vector<2x1xf32>
    %25 = tpu.reciprocal %24 : vector<2x1xf32> -> vector<2x1xf32>
    %26 = vector.broadcast %25 : vector<2x1xf32> to vector<2x8xf32>
    %27 = arith.mulf %20, %26 : vector<2x8xf32>
    %28 = vector.shape_cast %27 : vector<2x8xf32> to vector<2x8x1xf32>
    %29 = vector.broadcast %28 : vector<2x8x1xf32> to vector<2x8x32xf32>
    %30 = arith.mulf %29, %0 : vector<2x8x32xf32>
    %cst_12 = arith.constant dense<0.000000e+00> : vector<2x32xf32>
    %31 = vector.multi_reduction <add>, %30, %cst_12 [1] : vector<2x8x32xf32> to vector<2x32xf32>
    %c0_13 = arith.constant 0 : index
    %c0_14 = arith.constant 0 : index
    %32 = vector.load %arg5[%c0_13, %c0_14] : memref<2x32xf32, #tpu.memory_space<vmem>>, vector<2x32xf32>
    tpu.vector_store %arg5[%c0_13, %c0_14], %31 {strides = array<i32>} : memref<2x32xf32, #tpu.memory_space<vmem>>, vector<2x32xf32>,
    return
  }
  func.func @transform_0(%arg0: i32) -> (i32, i32, i32) {
    %c0_i32 = arith.constant 0 : i32
    %c0_i32_0 = arith.constant 0 : i32
    %c0_i32_1 = arith.constant 0 : i32
    return %arg0, %c0_i32, %c0_i32_0 : i32, i32, i32
  }
  func.func @transform_1(%arg0: i32) -> (i32, i32) {
    %c0_i32 = arith.constant 0 : i32
    %c0_i32_0 = arith.constant 0 : i32
    return %arg0, %c0_i32 : i32, i32
  }
  func.func @transform_2(%arg0: i32) -> (i32, i32) {
    %c0_i32 = arith.constant 0 : i32
    %c0_i32_0 = arith.constant 0 : i32
    %c0_i32_1 = arith.constant 0 : i32
    return %c0_i32, %c0_i32_0 : i32, i32
  }
  func.func @transform_3(%arg0: i32) -> (i32, i32) {
    %c0_i32 = arith.constant 0 : i32
    %c0_i32_0 = arith.constant 0 : i32
    %c0_i32_1 = arith.constant 0 : i32
    return %c0_i32, %c0_i32_0 : i32, i32
  }
  func.func @transform_4(%arg0: i32) -> (i32, i32) {
    %c0_i32 = arith.constant 0 : i32
    %c0_i32_0 = arith.constant 0 : i32
    return %arg0, %c0_i32 : i32, i32
  }
}

</mosaic_0001>

<bundles_post_ra>
// kernel: tpu_custom_call.1
= control target key start
LH: loop header
LB: loop body
LE: loop exit
PB: predicated region body
PF: predicated region fallthrough
CT: control target
= control target key end

     0   :  { %10 = vsyncpa [#allocation4], 0  ;;  %s401_s0 = inlined_call_operand.hbm [shape: f32[2,8,32], index: 0, kind: input, shape index: {}]   ;;  %s402_s1 = inlined_call_operand.vmem [shape: f32[2,8], index: 1, kind: input, shape index: {}]   ;;  %s403_s2 = inlined_call_operand.vmem [shape: f32[1,32], index: 2, kind: input, shape index: {}]   ;;  %s404_s3 = inlined_call_operand.<no memory space> [shape: f32[1,1], index: 3, kind: input, shape index: {}]   ;;  %s405_s4 = inlined_call_operand.hbm [shape: f32[2,32], index: 4, kind: output, shape index: {}]  }
   0x1   :  { %11 = vsyncpa [#allocation5], 0  ;;  %s299_s15 = smov [#allocation3]   ;;  %s251_s19 = scalar_lea.hbm %s401_s0, 256 }
   0x2   :  { %s17_s16 = sshll.u32 %s299_s15, 4  ;;  %p252_p0 = scmp.ne.s32.totalorder %s401_s0, %s251_s19  ;;  %s18_s16 = int_to_ptr.vmem [resolvable:$true] %s17_s16 }
   0x3   :  { %p255_p1 = scmp.lt.u32.totalorder %s251_s19, %s401_s0 }
   0x5   :  { %p257_p2 = pnand %p255_p1, %p252_p0 }
   0x7   :  { %260 = shalt.err (!%p257_p2)
}
   0x8   :  { %s261_s24 = scalar_lea.vmem %s18_s16, 256  ;;  %p266_p4 = scmp.lt.s32.totalorder %s18_s16, %s18_s16 }
   0x9   :  { %p262_p3 = scmp.ne.s32.totalorder %s18_s16, %s261_s24  ;;  %p267_p5 = scmp.lt.s32.totalorder %s261_s24, %s261_s24 }
   0xb   :  { %p268_p6 = por %p267_p5, %p266_p4 }
   0xd   :  { %p269_p7 = pnand %p268_p6, %p262_p3 }
   0xf   :  { %272 = shalt.err (!%p269_p7)
}
  0x10   :  { %s300_s25 = smov 128   ;;  %s301_s26 = smov 8  }
  0x11   :  { %23 = dma.hbm_to_vmem [thread:$0]  %s401_s0, 256, %s18_s16, [#allocation4], %s300_s25, %s300_s25, %s301_s26  }
  0x12   :  { %295 = dma.done.wait [#allocation4], 256  }
  0x13   :  { %296 = vsyncadd [#allocation4], 4294967040  ;;  %v57_v0 = vlaneseq  ;;  %v345_v5 = vld [vmem:[#allocation3] sm:$0xff]  ;;  %vm46_vm0 = vcmask 261120   ;;  %v350_v7 = vld [vmem:[#allocation3 + $0x8] sm:$0xff]  ;;  %v302_v16 = vmov 0   ;;  %v53_v17 = vstv %s404_s3 }
  0x14   :  { %v235_v6 = vld [vmem:[%s403_s2] ss:$0 sm:$0xff]  ;;  %241 = vset.pattern.permute.xlu0 %v302_v16  ;;  %242 = vset.pattern.permute.xlu1 %v302_v16  ;;  %vm93_vm1 = vcmask 1041409   ;;  %vm96_vm2 = vcmask 58368   ;;  %vm218_vm3 = vcmask 254976  }
  0x15   :  { %v58_v1 = vshrl.u32 %v57_v0, 7  ;;  %v84_v2 = vand.u32 127, %v57_v0  ;;  %v44_v9 = vmul.f32 %v235_v6, %v345_v5  ;;  %v45_v10 = vmul.f32 %v235_v6, %v350_v7  ;;  %v37_v11 = vld [vmem:[%s402_s1] sm:$0x3]  ;;  %s303_s1 = smov [#allocation6]  }
  0x16   :  { %s226_s3 = sshll.u32 %s303_s1, 4  ;;  %s227_s3 = int_to_ptr.vmem [resolvable:$true] %s226_s3 }
  0x17   :  { %v341_v3 = vsub.s32 %v84_v2, %v58_v1  ;;  %v343_v4 = vsub.s32 0, %v58_v1  ;;  %v352_v8 = vsub.s32 1, %v58_v1  ;;  %v47_v13 = vsel %vm46_vm0, %v44_v9, 0.0  ;;  %s273_s7 = scalar_lea.vmem %s227_s3, 32  ;;  %p278_p9 = scmp.lt.s32.totalorder %s227_s3, %s227_s3 }
  0x18   :  { %48 = vadd.xlane.f32.xlu0 %v47_v13  ;;  %v50_v15 = vsel %vm46_vm0, %v45_v10, 0.0  ;;  %p274_p8 = scmp.ne.s32.totalorder %s227_s3, %s273_s7  ;;  %p279_p10 = scmp.lt.s32.totalorder %s273_s7, %s273_s7 }
  0x19   :  { %v60_v12 = vrot.slane %v37_v11, %v343_v4  ;;  %v67_v14 = vrot.slane %v37_v11, %v352_v8 }
  0x1a   :  { %p280_p11 = por %p279_p10, %p278_p9 }
  0x1b   :  { %62 = vbcast.lane.b32.xlu1 %v60_v12, 256 }
  0x1c   :  { %51 = vadd.xlane.f32.xlu0 %v50_v15  ;;  %p281_p12 = pnand %p280_p11, %p274_p8 }
  0x1f   :  { %69 = vbcast.lane.b32.xlu1 %v67_v14, 256 }
  0x8d   :  { %v63_v18 = vpop.permute.xlu1 %62 }
  0x91   :  { %v70_v23 = vpop.permute.xlu1 %69 }
  0xa5   :  { %v49_v19 = vpop.xlane.xlu0 %48 }
  0xa6   :  { %v54_v20 = vadd.f32 %v53_v17, %v49_v19 }
  0xa8   :  { %v73_v21 = vmul.f32 %v63_v18, %v54_v20 }
  0xa9   :  { %v52_v22 = vpop.xlane.xlu0 %51 }
  0xaa   :  { %v55_v24 = vadd.f32 %v53_v17, %v52_v22  ;;  %78 = vperm.xlu0 %241, %v73_v21  }
  0xac   :  { %v74_v25 = vmul.f32 %v70_v23, %v55_v24 }
  0xae   :  { %81 = vperm.xlu1 %242, %v74_v25  }
 0x129   :  { %v79_v26 = vpop.permute.xlu0 %78 }
 0x12a   :  { %v88_v28 = vrot.slane %v79_v26, %v341_v3 }
 0x12d   :  { %v82_v27 = vpop.permute.xlu1 %81 }
 0x12e   :  { %v92_v29 = vrot.slane %v82_v27, %v341_v3 }
 0x130   :  { %v94_v30 = vsel %vm93_vm1, %v92_v29, %v88_v28 }
 0x131   :  { %v97_v31 = vsel %vm96_vm2, %v94_v30, -inf }
 0x132   :  { %98 = vmax.xlane.f32.xlu1 %v97_v31 }
 0x1bf   :  { %v99_v32 = vpop.xlane.xlu1 %98 }
 0x1c0   :  { %v104_v33 = vrot.slane %v99_v32, %v343_v4  ;;  %v108_v34 = vrot.slane %v99_v32, %v352_v8 }
 0x1c2   :  { %v111_v35 = vsub.f32 %v73_v21, %v104_v33  ;;  %v112_v36 = vsub.f32 %v74_v25, %v108_v34 }
 0x1c4   :  { %v113_v37 = vmul.f32 1.442695, %v111_v35  ;;  %v115_v38 = vmul.f32 1.442695, %v112_v36 }
 0x1c6   :  { %243 = vpow2.f32 %v113_v37 }
 0x1c7   :  { %245 = vpow2.f32 %v115_v38 }
 0x1d0   :  { %v244_v39 = vpop.eup %243 }
 0x1d1   :  { %v246_v40 = vpop.eup %245  ;;  %120 = vperm.xlu1 %242, %v244_v39  }
 0x1d2   :  { %123 = vperm.xlu0 %241, %v246_v40  }
 0x250   :  { %v121_v41 = vpop.permute.xlu1 %120 }
 0x251   :  { %v124_v42 = vpop.permute.xlu0 %123  ;;  %v128_v43 = vrot.slane %v121_v41, %v341_v3 }
 0x252   :  { %v132_v44 = vrot.slane %v124_v42, %v341_v3 }
 0x254   :  { %v133_v45 = vsel %vm93_vm1, %v132_v44, %v128_v43 }
 0x255   :  { %v135_v46 = vsel %vm96_vm2, %v133_v45, 0.0 }
 0x256   :  { %136 = vadd.xlane.f32.xlu0 %v135_v46 }
 0x2e3   :  { %v137_v47 = vpop.xlane.xlu0 %136 }
 0x2e4   :  { %247 = vrcp.f32 %v137_v47 }
 0x2ee   :  { %v248_v48 = vpop.eup %247 }
 0x2ef   :  { %v143_v49 = vrot.slane %v248_v48, %v343_v4  ;;  %v147_v51 = vrot.slane %v248_v48, %v352_v8 }
 0x2f1   :  { %v150_v50 = vmul.f32 %v244_v39, %v143_v49  ;;  %v151_v52 = vmul.f32 %v246_v40, %v147_v51 }
 0x2f3   :  { %155 = vperm.xlu1 %242, %v150_v50  }
 0x2f7   :  { %158 = vperm.xlu1 %242, %v151_v52  }
 0x372   :  { %v156_v53 = vpop.permute.xlu1 %155 }
 0x373   :  { %v163_v55 = vrot.slane %v156_v53, %v341_v3 }
 0x376   :  { %v159_v54 = vpop.permute.xlu1 %158 }
 0x377   :  { %v167_v56 = vrot.slane %v159_v54, %v341_v3 }
 0x379   :  { %v168_v57 = vsel %vm93_vm1, %v167_v56, %v163_v55 }
 0x37a   :  { %v170_v58 = vsel %vm96_vm2, %v168_v57, 0.0 }
 0x37b   :  { %171 = vadd.xlane.f32.xlu1 %v170_v58 }
 0x408   :  { %v172_v59 = vpop.xlane.xlu1 %171 }
 0x409   :  { %v173_v60 = vadd.f32 1e-13, %v172_v59 }
 0x40b   :  { %249 = vrcp.f32 %v173_v60 }
 0x415   :  { %v250_v61 = vpop.eup %249 }
 0x416   :  { %v179_v62 = vrot.slane %v250_v61, %v343_v4  ;;  %v183_v0 = vrot.slane %v250_v61, %v352_v8 }
 0x418   :  { %v186_v63 = vmul.f32 %v179_v62, %v150_v50  ;;  %v187_v1 = vmul.f32 %v183_v0, %v151_v52 }
 0x41a   :  { %190 = vperm.xlu0 %241, %v186_v63  }
 0x41e   :  { %195 = vperm.xlu0 %241, %v187_v1  }
 0x499   :  { %v191_v2 = vpop.permute.xlu0 %190 }
 0x49a   :  { %v198_v3 = vmul.f32 %v191_v2, %v345_v5 }
 0x49c   :  { %v200_v6 = vsel %vm46_vm0, %v198_v3, 0.0 }
 0x49d   :  { %v201_v9 = vrot.slane %v200_v6, 4  ;;  %v196_v10 = vpop.permute.xlu0 %195 }
 0x49e   :  { %v199_v11 = vmul.f32 %v196_v10, %v350_v7 }
 0x49f   :  { %v202_v12 = vadd.f32 %v201_v9, %v200_v6 }
 0x4a0   :  { %v207_v13 = vsel %vm46_vm0, %v199_v11, 0.0 }
 0x4a1   :  { %v203_v14 = vrot.slane %v202_v12, 2  ;;  %v208_v4 = vrot.slane %v207_v13, 4 }
 0x4a3   :  { %v204_v15 = vadd.f32 %v203_v14, %v202_v12  ;;  %v209_v16 = vadd.f32 %v208_v4, %v207_v13 }
 0x4a5   :  { %v210_v8 = vrot.slane %v209_v16, 2  ;;  %v205_v17 = vrot.slane %v204_v15, 1 }
 0x4a7   :  { %v211_v18 = vadd.f32 %v210_v8, %v209_v16  ;;  %v206_v5 = vadd.f32 %v205_v17, %v204_v15 }
 0x4a9   :  { %v212_v19 = vrot.slane %v211_v18, 1 }
 0x4ab   :  { %v213_v20 = vadd.f32 %v212_v19, %v211_v18 }
 0x4ad   :  { %v216_v21 = vsel %vm93_vm1, %v213_v20, %v206_v5 }
 0x4ae   :  { %219 = vst.msk [vmem:[#allocation6] sm:$0x3] %vm218_vm3, %v216_v21 }
 0x4af   :  { %284 = shalt.err (!%p281_p12)
}
 0x4b0   :  { %s285_s10 = scalar_lea.hbm %s405_s4, 32 }
 0x4b1   :  { %p286_p13 = scmp.ne.s32.totalorder %s405_s4, %s285_s10  ;;  %p289_p0 = scmp.lt.u32.totalorder %s285_s10, %s405_s4 }
 0x4b3   :  { %p291_p1 = pnand %p289_p0, %p286_p13 }
 0x4b5   :  { %294 = shalt.err (!%p291_p1)
}
 0x4b6   :  { %229 = dma.vmem_to_hbm [thread:$0]  %s227_s3, 32, %s405_s4, [#allocation5]  }
 0x4b7   :  { %297 = dma.done.wait [#allocation5], 32  }
 0x4b8   :  { %298 = vsyncadd [#allocation5], 4294967264 }
 0x4b9   :  { %233 = vsyncpa [#allocation4], 1 }
 0x4ba   :  { %234 = vsyncpa [#allocation5], 1 }

</bundles_post_ra>
